<compile_context>
chip_gen: v6e
topology: v6e:2x2x1
jax: 0.10.0
libtpu: 0.0.40
codegen_flags: <defaults>
</compile_context>

<pallas_src>
import functools

import jax
import jax.numpy as jnp
from jax.experimental import pallas as pl
from jax.experimental.pallas import tpu as pltpu

_LANES = 128


def _round_up(n, m):
    return ((n + m - 1) // m) * m


@functools.lru_cache(maxsize=None)
def _physical_vmem_bytes():
    """Physical VMEM of this chip; conservative fallback = v7x per-TC 64 MiB."""
    try:
        return int(pltpu.get_tpu_info().vmem_capacity_bytes)
    except Exception:
        return 64 * 1024 * 1024


@functools.lru_cache(maxsize=None)
def _lane_dense_labels_supported():
    """Compile-probe: can this Mosaic build lower the (1,1,n)->(n,1) relayout?"""
    def probe(lab_ref, o_ref):
        o_ref[...] = lab_ref[...].reshape(8, 1).astype(jnp.float32)

    try:
        fn = pl.pallas_call(
            probe, out_shape=jax.ShapeDtypeStruct((8, 1), jnp.float32))
        jax.jit(fn).lower(jnp.zeros((1, 1, 8), jnp.int32)).compile()
        return True
    except Exception:
        return False


def _vmem_needed_bytes(tn, d, p_pad, x_item, lane_dense_labels):
    """Honest VMEM budget: streamed buffers, resident weights, scratch, f32
    intermediates (logits / exp / where live copies)."""
    x_bufs = 2 * tn * d * x_item
    lab_bufs = 2 * (tn * 32 if lane_dense_labels else tn * 512)
    w_bufs = 2 * (d * p_pad * x_item + 8 * p_pad * 4)
    lane_iota = tn * p_pad * 4
    f32_interm = 3 * tn * p_pad * 4
    return x_bufs + lab_bufs + w_bufs + lane_iota + f32_interm + (1 << 16)


def _make_kernel(n_total, n_pad, tn, tiles_per_shard, lane_dense_labels):
    """Builds the tiled kernel; all closure args are static Python ints/bools."""
    first_masked = n_total // tn          # first flat tile containing pad rows
    needs_mask = (n_pad != n_total)

    def kernel(x_ref, w_ref, b_ref, lab_ref, loss_ref, acc_ref, lane_ref):
        c = pl.program_id(0)              # row shard (parallel / 2nd TC on v7x)
        i = pl.program_id(1)              # tile within shard (reduction axis)

        @pl.when(i == 0)
        def _init():
            # Hoisted lane iota (reused every step) + per-shard accumulators.
            lane_ref[...] = jax.lax.broadcasted_iota(
                jnp.int32, lane_ref.shape, 1)
            loss_ref[...] = jnp.zeros_like(loss_ref)
            acc_ref[...] = jnp.zeros_like(acc_ref)

        x = x_ref[...]                                  # (tn, D)   bf16/native
        w = w_ref[...]                                  # (D, Ppad) same dtype
        b = b_ref[...].astype(jnp.float32)              # (1, Ppad) f32, -1e30 pad

        if lane_dense_labels:
            # (1, 1, tn) lane-dense DMA -> one per-tile relayout to a column.
            labels = lab_ref[...].reshape(tn, 1)        # (tn, 1) int32
        else:
            labels = lab_ref[...]                       # (tn, 1) int32

        # Linear classifier on the MXU, f32 accumulation.
        logits = jnp.dot(x, w, preferred_element_type=jnp.float32) + b

        onehot = lane_ref[...] == labels                # (tn, Ppad) bool

        # Numerically-stable cross entropy (sums here, mean in the wrapper).
        max_val = jnp.max(logits, axis=-1, keepdims=True)                 # (tn,1)
        lse = max_val + jnp.log(
            jnp.sum(jnp.exp(logits - max_val), axis=-1, keepdims=True))   # (tn,1)
        correct_logit = jnp.sum(
            jnp.where(onehot, logits, 0.0), axis=-1, keepdims=True)       # (tn,1)
        losses = lse - correct_logit                                      # (tn,1)

        # Accuracy: "label attains the row max".  torch.max tie-breaks to the
        # first index; this differs only when two logits are exactly equal.
        correct = (correct_logit >= max_val).astype(jnp.float32)          # (tn,1)

        flat_tile = c * tiles_per_shard + i

        def _accumulate(loss_tile, correct_tile):
            loss_ref[...] += jnp.sum(loss_tile, axis=0, keepdims=True)[None]
            acc_ref[...] += jnp.sum(correct_tile, axis=0, keepdims=True)[None]

        if not needs_mask:
            _accumulate(losses, correct)
        else:
            # Mask cost is only paid on tiles that actually contain pad rows.
            @pl.when(flat_tile < first_masked)
            def _full_tile():
                _accumulate(losses, correct)

            @pl.when(flat_tile >= first_masked)
            def _padded_tile():
                row = flat_tile * tn + jax.lax.broadcasted_iota(
                    jnp.int32, (tn, 1), 0)
                valid = (row < n_total).astype(jnp.float32)
                _accumulate(losses * valid, correct * valid)

    return kernel


def prepare_classifier_params(weight, bias, feat_dtype=jnp.bfloat16):
    """One-time prep: nn.Linear (P, D) weight -> (D, Ppad) in the matmul dtype.

    Padded logit columns get bias -1e30 so they never win max / LSE / accuracy.
    Phones are padded only to 128 lanes: the kernel is HBM/XLU bound, not MXU
    bound, so wider padding would only add wasted exp / reduce work.
    """
    n_phones, dim_encoder = weight.shape
    p_pad = max(_LANES, _round_up(n_phones, _LANES))
    w_pad = jnp.zeros((dim_encoder, p_pad), dtype=feat_dtype)
    w_pad = w_pad.at[:, :n_phones].set(weight.T.astype(feat_dtype))
    b_pad = jnp.full((1, p_pad), -1e30, dtype=jnp.float32)
    b_pad = b_pad.at[0, :n_phones].set(bias.astype(jnp.float32))
    return w_pad, b_pad


def phone_criterion_forward(c_feature, other_encoded, label, w_pad, b_pad,
                            on_encoder=False, tile_rows=8192,
                            num_row_shards=2, compute_dtype=None,
                            lane_dense_labels=True):
    """Replicates PhoneCriterion.forward (nLayers=1 path).

    c_feature, other_encoded: (B, S, D)
    label:                    (B, S) int
    w_pad, b_pad:             from prepare_classifier_params
    Returns (loss, acc), each of shape (1, 1) f32.
    """
    feats = other_encoded if on_encoder else c_feature
    B, S, D = feats.shape
    N = B * S
    _, P_pad = w_pad.shape

    x = feats.reshape(N, D)
    # bf16 streaming of the only large input (MXU accumulates in f32 anyway).
    if compute_dtype is None:
        compute_dtype = jnp.bfloat16 if x.dtype == jnp.float32 else x.dtype
    x = x.astype(compute_dtype)
    if w_pad.dtype != x.dtype:
        w_pad = w_pad.astype(x.dtype)
    x_item = jnp.dtype(x.dtype).itemsize
    sub = 8 * (4 // x_item)            # packed sublane count: f32->8, bf16->16

    use_lane_dense = bool(lane_dense_labels) and _lane_dense_labels_supported()

    # Row tile: as large as the VMEM budget allows (per-step overhead ~0.35us);
    # budget against the physical VMEM of this generation (v7x: 64 MiB per TC).
    vmem_cap = (_physical_vmem_bytes() * 3) // 4
    tn = max(sub, min(_round_up(tile_rows, sub), _round_up(N, sub)))
    while tn > sub and _vmem_needed_bytes(tn, D, P_pad, x_item,
                                          use_lane_dense) > vmem_cap:
        tn = max(sub, _round_up(tn // 2, sub))

    num_shards = max(1, min(int(num_row_shards), pl.cdiv(N, tn)))
    n_pad = _round_up(N, tn * num_shards)
    tiles_per_shard = n_pad // (tn * num_shards)
    total_tiles = num_shards * tiles_per_shard

    lab = label.reshape(N).astype(jnp.int32)
    if n_pad != N:
        x = jnp.pad(x, ((0, n_pad - N), (0, 0)))
        lab = jnp.pad(lab, (0, n_pad - N))

    if use_lane_dense:
        lab = lab.reshape(total_tiles, 1, tn)
        lab_spec = pl.BlockSpec((1, 1, tn),
                                lambda c, i: (c * tiles_per_shard + i, 0, 0))
    else:
        # TODO(synk): fallback for Mosaic builds without the lane->sublane
        #             label relayout; slower (strided) label DMA, same numerics.
        lab = lab.reshape(n_pad, 1)
        lab_spec = pl.BlockSpec((tn, 1),
                                lambda c, i: (c * tiles_per_shard + i, 0))

    kernel = _make_kernel(N, n_pad, tn, tiles_per_shard, use_lane_dense)

    bytes_accessed = (n_pad * D * x_item + n_pad * 4
                      + D * P_pad * x_item + 8 * P_pad * 4
                      + 2 * num_shards * 4)
    cost = pl.CostEstimate(flops=2 * n_pad * D * P_pad,
                           transcendentals=n_pad * (P_pad + 1),
                           bytes_accessed=bytes_accessed)

    vmem_limit = int(min(vmem_cap,
                         max(16 * 1024 * 1024,
                             (_vmem_needed_bytes(tn, D, P_pad, x_item,
                                                 use_lane_dense) * 5) // 4)))

    grid_spec = pltpu.PrefetchScalarGridSpec(
        num_scalar_prefetch=0,
        grid=(num_shards, tiles_per_shard),
        in_specs=[
            pl.BlockSpec((tn, D),                            # x (streamed)
                         lambda c, i: (c * tiles_per_shard + i, 0)),
            pl.BlockSpec((D, P_pad), lambda c, i: (0, 0)),   # weight (resident)
            pl.BlockSpec((1, P_pad), lambda c, i: (0, 0)),   # bias   (resident)
            lab_spec,                                        # labels (streamed)
        ],
        out_specs=(
            pl.BlockSpec((1, 1, 1), lambda c, i: (c, 0, 0)),  # loss partials
            pl.BlockSpec((1, 1, 1), lambda c, i: (c, 0, 0)),  # correct counts
        ),
        scratch_shapes=[
            pltpu.VMEM((tn, P_pad), jnp.int32),  # hoisted lane iota
        ],
    )

    loss_parts, correct_parts = pl.pallas_call(
        kernel,
        out_shape=(
            jax.ShapeDtypeStruct((num_shards, 1, 1), jnp.float32),
            jax.ShapeDtypeStruct((num_shards, 1, 1), jnp.float32),
        ),
        grid_spec=grid_spec,
        compiler_params=pltpu.CompilerParams(
            dimension_semantics=("parallel", "arbitrary"),
            vmem_limit_bytes=vmem_limit,
        ),
        cost_estimate=cost,
    )(x, w_pad, b_pad, lab)

    inv_n = jnp.float32(1.0 / N)
    loss = (jnp.sum(loss_parts) * inv_n).reshape(1, 1)
    acc = (jnp.sum(correct_parts) * inv_n).reshape(1, 1)
    return loss, acc


if __name__ == "__main__":
    master_key = jax.random.PRNGKey(0)

    def reference(feats, label, weight, bias):
        # bf16-rounded reference (the kernel streams x / W in bf16, f32 accum).
        b, s, d = feats.shape
        x32 = feats.reshape(b * s, d).astype(jnp.bfloat16).astype(jnp.float32)
        w32 = weight.astype(jnp.bfloat16).astype(jnp.float32)
        logits = x32 @ w32.T + bias.astype(jnp.float32)
        lab = label.reshape(-1)
        picked = jnp.take_along_axis(logits, lab[:, None], axis=-1)[:, 0]
        ref_loss = jnp.mean(jax.nn.logsumexp(logits, axis=-1) - picked)
        ref_acc = jnp.mean(
            (jnp.argmax(logits, axis=-1) == lab).astype(jnp.float32))
        return ref_loss, ref_acc

    def run_case(b, s, d, p, on_encoder, tile_rows, num_row_shards, key):
        k1, k2, k3, k4, k5 = jax.random.split(key, 5)
        c_feature = jax.random.normal(k1, (b, s, d), dtype=jnp.float32)
        other_encoded = jax.random.normal(k2, (b, s, d), dtype=jnp.float32)
        label = jax.random.randint(k3, (b, s), 0, p, dtype=jnp.int32)

        # nn.Linear(dimEncoder, nPhones)-style init (uniform +/- 1/sqrt(D)).
        bound = 1.0 / jnp.sqrt(jnp.float32(d))
        weight = jax.random.uniform(k4, (p, d), minval=-bound, maxval=bound,
                                    dtype=jnp.float32)
        bias = jax.random.uniform(k5, (p,), minval=-bound, maxval=bound,
                                  dtype=jnp.float32)

        w_pad, b_pad = prepare_classifier_params(weight, bias)
        loss, acc = phone_criterion_forward(
            c_feature, other_encoded, label, w_pad, b_pad,
            on_encoder=on_encoder, tile_rows=tile_rows,
            num_row_shards=num_row_shards)
        jax.block_until_ready((loss, acc))

        feats = other_encoded if on_encoder else c_feature
        ref_loss, ref_acc = reference(feats, label, weight, bias)
        assert loss.shape == (1, 1) and acc.shape == (1, 1)
        assert jnp.allclose(loss[0, 0], ref_loss, atol=1e-3, rtol=1e-3), (
            loss, ref_loss)
        assert jnp.allclose(acc[0, 0], ref_acc, atol=1e-6), (acc, ref_acc)

    # Case 1: module-consistent small shapes (batch=2, seq=8, dimEncoder=32,
    #         nPhones=16), single tile, cFeature branch.
    run_case(2, 8, 32, 16, False, 8192, 1, jax.random.fold_in(master_key, 0))
    # Case 2: exercises row padding/masking, a multi-tile grid, 2-way row
    #         sharding (v7x second-TensorCore path) and the onEncoder branch.
    run_case(3, 50, 32, 16, True, 64, 2, jax.random.fold_in(master_key, 1))

    print("KERNEL_OK")
</pallas_src>

<mosaic_0001>
module attributes {stable_mosaic.version = 11 : i64} {
  func.func @kernel(%arg0: i32, %arg1: i32, %arg2: memref<16x32xbf16, #tpu.memory_space<vmem>>, %arg3: memref<32x128xbf16, #tpu.memory_space<vmem>>, %arg4: memref<1x128xf32, #tpu.memory_space<vmem>>, %arg5: memref<16x1xi32, #tpu.memory_space<vmem>>, %arg6: memref<1x1x1xf32, #tpu.memory_space<vmem>>, %arg7: memref<1x1x1xf32, #tpu.memory_space<vmem>>, %arg8: memref<16x128xi32, #tpu.memory_space<vmem>>) attributes {dimension_semantics = [#tpu.dimension_semantics<parallel>, #tpu.dimension_semantics<arbitrary>], iteration_bounds = array<i64: 1, 1>, scalar_prefetch = 0 : i64, scratch_operands = 1 : i64, tpu.core_type = #tpu.core_type<tc>, window_params = [{transform_indices = @transform_0, window_bounds = array<i64: 16, 32>}, {pipeline_mode = #tpu.pipeline_mode<synchronous>, transform_indices = @transform_1, window_bounds = array<i64: 32, 128>}, {pipeline_mode = #tpu.pipeline_mode<synchronous>, transform_indices = @transform_2, window_bounds = array<i64: 1, 128>}, {transform_indices = @transform_3, window_bounds = array<i64: 16, 1>}, {transform_indices = @transform_4, window_bounds = array<i64: 1, 1, 1>}, {transform_indices = @transform_5, window_bounds = array<i64: 1, 1, 1>}]} {
    %c0_i32 = arith.constant 0 : i32
    %0 = arith.cmpi eq, %arg1, %c0_i32 : i32
    %1 = arith.extui %0 : i1 to i32
    %c0_i32_0 = arith.constant 0 : i32
    %2 = arith.cmpi ne, %1, %c0_i32_0 : i32
    scf.if %2 {
      %42 = tpu.iota {dimensions = array<i32: 1>} : vector<16x128xi32>
      %c0_28 = arith.constant 0 : index
      %c0_29 = arith.constant 0 : index
      %43 = vector.load %arg8[%c0_28, %c0_29] : memref<16x128xi32, #tpu.memory_space<vmem>>, vector<16x128xi32>
      tpu.vector_store %arg8[%c0_28, %c0_29], %42 {strides = array<i32>} : memref<16x128xi32, #tpu.memory_space<vmem>>, vector<16x128xi32>,
      %cst_30 = arith.constant 0.000000e+00 : f32
      %44 = vector.broadcast %cst_30 : f32 to vector<1x1x1xf32>
      %c0_31 = arith.constant 0 : index
      %c0_32 = arith.constant 0 : index
      %c0_33 = arith.constant 0 : index
      %45 = vector.load %arg6[%c0_31, %c0_32, %c0_33] : memref<1x1x1xf32, #tpu.memory_space<vmem>>, vector<1x1x1xf32>
      tpu.vector_store %arg6[%c0_31, %c0_32, %c0_33], %44 {strides = array<i32>} : memref<1x1x1xf32, #tpu.memory_space<vmem>>, vector<1x1x1xf32>,
      %cst_34 = arith.constant 0.000000e+00 : f32
      %46 = vector.broadcast %cst_34 : f32 to vector<1x1x1xf32>
      %c0_35 = arith.constant 0 : index
      %c0_36 = arith.constant 0 : index
      %c0_37 = arith.constant 0 : index
      %47 = vector.load %arg7[%c0_35, %c0_36, %c0_37] : memref<1x1x1xf32, #tpu.memory_space<vmem>>, vector<1x1x1xf32>
      tpu.vector_store %arg7[%c0_35, %c0_36, %c0_37], %46 {strides = array<i32>} : memref<1x1x1xf32, #tpu.memory_space<vmem>>, vector<1x1x1xf32>,
    } else {
    }
    %c0 = arith.constant 0 : index
    %c0_1 = arith.constant 0 : index
    %3 = vector.load %arg2[%c0, %c0_1] : memref<16x32xbf16, #tpu.memory_space<vmem>>, vector<16x32xbf16>
    %c0_2 = arith.constant 0 : index
    %c0_3 = arith.constant 0 : index
    %4 = vector.load %arg3[%c0_2, %c0_3] : memref<32x128xbf16, #tpu.memory_space<vmem>>, vector<32x128xbf16>
    %c0_4 = arith.constant 0 : index
    %c0_5 = arith.constant 0 : index
    %5 = vector.load %arg4[%c0_4, %c0_5] : memref<1x128xf32, #tpu.memory_space<vmem>>, vector<1x128xf32>
    %c0_6 = arith.constant 0 : index
    %c0_7 = arith.constant 0 : index
    %6 = vector.load %arg5[%c0_6, %c0_7] : memref<16x1xi32, #tpu.memory_space<vmem>>, vector<16x1xi32>
    %cst = arith.constant dense<0.000000e+00> : vector<16x128xf32>
    %7 = tpu.matmul %3, %4, %cst {dimension_numbers = #tpu.dot_dimension_numbers<[1], [0], [0], [1], [0, 0, 1, 1], [], []>} : vector<16x32xbf16>, vector<32x128xbf16>, vector<16x128xf32> -> vector<16x128xf32>
    %8 = vector.broadcast %5 : vector<1x128xf32> to vector<16x128xf32>
    %9 = arith.addf %7, %8 : vector<16x128xf32>
    %c0_8 = arith.constant 0 : index
    %c0_9 = arith.constant 0 : index
    %10 = vector.load %arg8[%c0_8, %c0_9] : memref<16x128xi32, #tpu.memory_space<vmem>>, vector<16x128xi32>
    %11 = vector.broadcast %6 : vector<16x1xi32> to vector<16x128xi32>
    %12 = arith.cmpi eq, %10, %11 : vector<16x128xi32>
    %cst_10 = arith.constant dense<0xFF800000> : vector<16xf32>
    %13 = vector.multi_reduction <maximumf>, %9, %cst_10 [1] : vector<16x128xf32> to vector<16xf32>
    %14 = vector.shape_cast %13 : vector<16xf32> to vector<16x1xf32>
    %15 = vector.broadcast %14 : vector<16x1xf32> to vector<16x128xf32>
    %16 = arith.subf %9, %15 : vector<16x128xf32>
    %17 = math.exp %16 : vector<16x128xf32>
    %cst_11 = arith.constant dense<0.000000e+00> : vector<16xf32>
    %18 = vector.multi_reduction <add>, %17, %cst_11 [1] : vector<16x128xf32> to vector<16xf32>
    %19 = vector.shape_cast %18 : vector<16xf32> to vector<16x1xf32>
    %20 = math.log %19 : vector<16x1xf32>
    %21 = arith.addf %14, %20 : vector<16x1xf32>
    %cst_12 = arith.constant 0.000000e+00 : f32
    %22 = vector.broadcast %cst_12 : f32 to vector<16x128xf32>
    %23 = arith.select %12, %9, %22 : vector<16x128xi1>, vector<16x128xf32>
    %cst_13 = arith.constant dense<0.000000e+00> : vector<16xf32>
    %24 = vector.multi_reduction <add>, %23, %cst_13 [1] : vector<16x128xf32> to vector<16xf32>
    %25 = vector.shape_cast %24 : vector<16xf32> to vector<16x1xf32>
    %26 = arith.subf %21, %25 : vector<16x1xf32>
    %27 = arith.cmpf oge, %25, %14 : vector<16x1xf32>
    %28 = arith.extui %27 : vector<16x1xi1> to vector<16x1xi32>
    %29 = arith.sitofp %28 : vector<16x1xi32> to vector<16x1xf32>
    %c0_14 = arith.constant 0 : index
    %c0_15 = arith.constant 0 : index
    %c0_16 = arith.constant 0 : index
    %30 = vector.load %arg6[%c0_14, %c0_15, %c0_16] : memref<1x1x1xf32, #tpu.memory_space<vmem>>, vector<1x1x1xf32>
    %cst_17 = arith.constant dense<0.000000e+00> : vector<1xf32>
    %31 = vector.multi_reduction <add>, %26, %cst_17 [0] : vector<16x1xf32> to vector<1xf32>
    %32 = vector.shape_cast %31 : vector<1xf32> to vector<1x1xf32>
    %33 = vector.shape_cast %32 : vector<1x1xf32> to vector<1x1x1xf32>
    %34 = arith.addf %30, %33 : vector<1x1x1xf32>
    %c0_18 = arith.constant 0 : index
    %c0_19 = arith.constant 0 : index
    %c0_20 = arith.constant 0 : index
    %35 = vector.load %arg6[%c0_18, %c0_19, %c0_20] : memref<1x1x1xf32, #tpu.memory_space<vmem>>, vector<1x1x1xf32>
    tpu.vector_store %arg6[%c0_18, %c0_19, %c0_20], %34 {strides = array<i32>} : memref<1x1x1xf32, #tpu.memory_space<vmem>>, vector<1x1x1xf32>,
    %c0_21 = arith.constant 0 : index
    %c0_22 = arith.constant 0 : index
    %c0_23 = arith.constant 0 : index
    %36 = vector.load %arg7[%c0_21, %c0_22, %c0_23] : memref<1x1x1xf32, #tpu.memory_space<vmem>>, vector<1x1x1xf32>
    %cst_24 = arith.constant dense<0.000000e+00> : vector<1xf32>
    %37 = vector.multi_reduction <add>, %29, %cst_24 [0] : vector<16x1xf32> to vector<1xf32>
    %38 = vector.shape_cast %37 : vector<1xf32> to vector<1x1xf32>
    %39 = vector.shape_cast %38 : vector<1x1xf32> to vector<1x1x1xf32>
    %40 = arith.addf %36, %39 : vector<1x1x1xf32>
    %c0_25 = arith.constant 0 : index
    %c0_26 = arith.constant 0 : index
    %c0_27 = arith.constant 0 : index
    %41 = vector.load %arg7[%c0_25, %c0_26, %c0_27] : memref<1x1x1xf32, #tpu.memory_space<vmem>>, vector<1x1x1xf32>
    tpu.vector_store %arg7[%c0_25, %c0_26, %c0_27], %40 {strides = array<i32>} : memref<1x1x1xf32, #tpu.memory_space<vmem>>, vector<1x1x1xf32>,
    return
  }
  func.func @transform_0(%arg0: i32, %arg1: i32) -> (i32, i32) {
    %c1_i32 = arith.constant 1 : i32
    %0 = arith.muli %arg0, %c1_i32 : i32
    %1 = arith.addi %0, %arg1 : i32
    %c0_i32 = arith.constant 0 : i32
    %c0_i32_0 = arith.constant 0 : i32
    return %1, %c0_i32 : i32, i32
  }
  func.func @transform_1(%arg0: i32, %arg1: i32) -> (i32, i32) {
    %c0_i32 = arith.constant 0 : i32
    %c0_i32_0 = arith.constant 0 : i32
    %c0_i32_1 = arith.constant 0 : i32
    return %c0_i32, %c0_i32_0 : i32, i32
  }
  func.func @transform_2(%arg0: i32, %arg1: i32) -> (i32, i32) {
    %c0_i32 = arith.constant 0 : i32
    %c0_i32_0 = arith.constant 0 : i32
    %c0_i32_1 = arith.constant 0 : i32
    return %c0_i32, %c0_i32_0 : i32, i32
  }
  func.func @transform_3(%arg0: i32, %arg1: i32) -> (i32, i32) {
    %c1_i32 = arith.constant 1 : i32
    %0 = arith.muli %arg0, %c1_i32 : i32
    %1 = arith.addi %0, %arg1 : i32
    %c0_i32 = arith.constant 0 : i32
    %c0_i32_0 = arith.constant 0 : i32
    return %1, %c0_i32 : i32, i32
  }
  func.func @transform_4(%arg0: i32, %arg1: i32) -> (i32, i32, i32) {
    %c0_i32 = arith.constant 0 : i32
    %c0_i32_0 = arith.constant 0 : i32
    %c0_i32_1 = arith.constant 0 : i32
    return %arg0, %c0_i32, %c0_i32_0 : i32, i32, i32
  }
  func.func @transform_5(%arg0: i32, %arg1: i32) -> (i32, i32, i32) {
    %c0_i32 = arith.constant 0 : i32
    %c0_i32_0 = arith.constant 0 : i32
    %c0_i32_1 = arith.constant 0 : i32
    return %arg0, %c0_i32, %c0_i32_0 : i32, i32, i32
  }
}

</mosaic_0001>

<bundles_post_ra>
// kernel: tpu_custom_call.1
= control target key start
LH: loop header
LB: loop body
LE: loop exit
PB: predicated region body
PF: predicated region fallthrough
CT: control target
= control target key end

     0   :  { %11 = vsyncpa [#allocation4], 0  ;;  %s423_s0 = inlined_call_operand.hbm [shape: bf16[16,32], index: 0, kind: input, shape index: {}]   ;;  %s424_s1 = inlined_call_operand.vmem [shape: bf16[32,128], index: 1, kind: input, shape index: {}]   ;;  %s425_s2 = inlined_call_operand.vmem [shape: f32[1,128], index: 2, kind: input, shape index: {}]   ;;  %s426_s3 = inlined_call_operand.vmem [shape: s32[16,1], index: 3, kind: input, shape index: {}]   ;;  %s427_s4 = inlined_call_operand.hbm [shape: f32[1,1,1], index: 4, kind: output, shape index: {0}]   ;;  %s428_s5 = inlined_call_operand.hbm [shape: f32[1,1,1], index: 5, kind: output, shape index: {1}]  }
   0x1   :  { %12 = vsyncpa [#allocation5], 0 }
   0x2   :  { %13 = vsyncpa [#allocation8], 0  ;;  %s357_s18 = smov [#allocation3]  }
   0x3   :  { %s23_s19 = sshll.u32 %s357_s18, 4  ;;  %s24_s19 = int_to_ptr.vmem [resolvable:$true] %s23_s19 }
   0x4   :  { %s299_s20 = scalar_lea.vmem %s24_s19, 128  ;;  %p304_p1 = scmp.lt.s32.totalorder %s24_s19, %s24_s19 }
   0x5   :  { %p300_p0 = scmp.ne.s32.totalorder %s24_s19, %s299_s20  ;;  %p305_p2 = scmp.lt.s32.totalorder %s299_s20, %s299_s20 }
   0x7   :  { %p306_p3 = por %p305_p2, %p304_p1 }
   0x9   :  { %p307_p4 = pnand %p306_p3, %p300_p0 }
   0xb   :  { %310 = shalt.err (!%p307_p4)
}
   0xc   :  { %s358_s21 = smov 64   ;;  %s359_s22 = smov 4  }
   0xd   :  { %29 = dma.hbm_to_vmem [thread:$0]  %s423_s0, 128, %s24_s19, [#allocation4], %s358_s21, %s358_s21, %s359_s22  }
   0xe   :  { %351 = dma.done.wait [#allocation4], 128  }
   0xf   :  { %352 = vsyncadd [#allocation4], 4294967168  ;;  %v360_v0 = vmov 0.0   ;;  %vm361_vm0 = vmmov 0   ;;  %v362_v1 = vmov 0   ;;  %v280_v2 = vld [vmem:[%s424_s1 + $0x8] sm:$0xff]   ;;  %v68_v20 = vlaneseq }
  0x10   :  { %262 = vmatprep.subr.bf16.mxu0 %v360_v0  ;;  %266 = vmatprep.mubr.msk.bf16.mxu0 %vm361_vm0, %v360_v0  ;;  %v281_v3 = vld [vmem:[%s424_s1] sm:$0xff]   ;;  %v83_v6 = vld [vmem:[%s426_s3 + $0x8] sm:$0xff]  ;;  %vm107_vm1 = vcmask 261120   ;;  %vm72_vm4 = vcmask 0   ;;  %s363_s1 = smov [#allocation7]  }
  0x11   :  { %278 = vset.pattern.permute.xlu1 %v362_v1  ;;  %279 = vset.pattern.permute.xlu0 %v362_v1  ;;  %v82_v4 = vld [vmem:[%s426_s3] sm:$0xff]  ;;  %v69_v22 = vand.u32 127, %v68_v20  ;;  %73 = vst.msk [vmem:[#allocation6] sm:$0x1] %vm72_vm4, %v360_v0  ;;  %74 = vst.msk [vmem:[#allocation7] sm:$0x1] %vm72_vm4, %v360_v0 }
  0x12   :  { %263 = vmatpush3.bf16.msra.mxu0 %v280_v2  ;;  %155 = vperm.xlu1 %278, %v82_v4   ;;  %v282_v5 = vld [vmem:[#allocation3] sm:$0xff]  }
  0x13   :  { %264 = vmatprep.subr.bf16.mxu0 %v360_v0  ;;  %v252_v7 = vld [vmem:[%s425_s2] ss:$0 sm:$0xff]  ;;  %s233_s2 = sshll.u32 %s363_s1, 4  ;;  %s234_s2 = int_to_ptr.vmem [resolvable:$true] %s233_s2 }
  0x14   :  { %s311_s3 = scalar_lea.vmem %s234_s2, 16  ;;  %s315_s9 = scalar_lea.vmem %s234_s2, 32 }
  0x15   :  { %p312_p5 = scmp.ne.s32.totalorder %s234_s2, %s311_s3  ;;  %p316_p6 = scmp.lt.s32.totalorder %s234_s2, %s234_s2 }
  0x16   :  { %265 = vmatpush3.bf16.msra.mxu0 %v281_v3  ;;  %158 = vperm.xlu1 %278, %v83_v6   ;;  %p317_p7 = scmp.lt.s32.totalorder %s315_s9, %s311_s3 }
  0x18   :  { %v207_v46 = vld [vmem:[#allocation7] sm:$0x1]  ;;  %p318_p8 = por %p317_p7, %p316_p6 }
  0x19   :  { %267 = vmatmul.mubr.msk.bf16.vlgmr.msra.gmra.mxu0 %vm107_vm1, %v282_v5 }
  0x1a   :  { %p319_p9 = pnand %p318_p8, %p312_p5 }
  0x8d   :  { %v156_v21 = vpop.permute.xlu1 %155 }
  0x8e   :  { %vm160_vm2 = vcmp.eq.s32.totalorder %v69_v22, %v156_v21 }
  0x91   :  { %v159_v24 = vpop.permute.xlu1 %158 }
  0x92   :  { %vm161_vm3 = vcmp.eq.s32.totalorder %v69_v22, %v159_v24 }
  0xd9   :  { %v145_v8 = vpop.f32.mrf.mxu0 }
  0xda   :  { %v146_v9 = vadd.f32 %v252_v7, %v145_v8 }
  0xdb   :  { %v268_v10 = vpop.f32.mrf.mxu0 }
  0xdc   :  { %162 = vmax.xlane.f32.xlu0 %v146_v9  ;;  %v182_v26 = vsel %vm160_vm2, %v146_v9, 0.0 }
  0xdd   :  { %v148_v11 = vpop.f32.mrf.mxu0 }
  0xde   :  { %v149_v12 = vadd.f32 %v252_v7, %v148_v11 }
  0xdf   :  { %v269_v13 = vpop.f32.mrf.mxu0 }
  0xe0   :  { %164 = vmax.xlane.f32.xlu0 %v149_v12  ;;  %v183_v27 = vsel %vm161_vm3, %v149_v12, 0.0 }
 0x165   :  { %v163_v14 = vpop.xlane.xlu0 %162 }
 0x166   :  { %v166_v15 = vsub.f32 %v146_v9, %v163_v14 }
 0x168   :  { %v168_v16 = vmul.f32 1.442695, %v166_v15 }
 0x169   :  { %v165_v17 = vpop.xlane.xlu0 %164 }
 0x16a   :  { %283 = vpow2.f32 %v168_v16  ;;  %v167_v18 = vsub.f32 %v149_v12, %v165_v17 }
 0x16c   :  { %v170_v19 = vmul.f32 1.442695, %v167_v18 }
 0x16e   :  { %285 = vpow2.f32 %v170_v19 }
 0x177   :  { %v284_v23 = vpop.eup %283 }
 0x178   :  { %172 = vadd.xlane.f32.xlu0 %v284_v23 }
 0x17b   :  { %v286_v25 = vpop.eup %285 }
 0x17c   :  { %184 = vadd.xlane.f32.xlu0 %v182_v26  ;;  %174 = vadd.xlane.f32.xlu1 %v286_v25 }
 0x180   :  { %186 = vadd.xlane.f32.xlu0 %v183_v27 }
 0x201   :  { %v173_v28 = vpop.xlane.xlu0 %172 }
 0x202   :  { %287 = vlog2.f32 %v173_v28 }
 0x205   :  { %v175_v29 = vpop.xlane.xlu1 %174  ;;  %v185_v30 = vpop.xlane.xlu0 %184 }
 0x206   :  { %289 = vlog2.f32 %v175_v29  ;;  %vm190_vm5 = vcmp.ge.f32.partialorder %v185_v30, %v163_v14 }
 0x207   :  { %v257_v32 = vsel %vm190_vm5, 1.0, %v360_v0 }
 0x209   :  { %v187_v31 = vpop.xlane.xlu0 %186 }
 0x20a   :  { %vm191_vm6 = vcmp.ge.f32.partialorder %v187_v31, %v165_v17 }
 0x20b   :  { %v258_v33 = vsel %vm191_vm6, 1.0, %v360_v0 }
 0x20c   :  { %v208_v34 = vadd.f32 %v258_v33, %v257_v32 }
 0x20e   :  { %v209_v35 = vrot.slane %v208_v34, 4 }
 0x20f   :  { %v288_v36 = vpop.eup %287 }
 0x210   :  { %v177_v37 = vmul.f32 0.6931472, %v288_v36  ;;  %v210_v38 = vadd.f32 %v209_v35, %v208_v34 }
 0x212   :  { %v211_v39 = vrot.slane %v210_v38, 2  ;;  %v180_v42 = vadd.f32 %v177_v37, %v163_v14 }
 0x213   :  { %v290_v40 = vpop.eup %289 }
 0x214   :  { %v179_v41 = vmul.f32 0.6931472, %v290_v40  ;;  %v212_v43 = vadd.f32 %v211_v39, %v210_v38  ;;  %v188_v47 = vsub.f32 %v180_v42, %v185_v30 }
 0x216   :  { %v181_v44 = vadd.f32 %v179_v41, %v165_v17  ;;  %v213_v45 = vrot.slane %v212_v43, 1 }
 0x218   :  { %v189_v48 = vsub.f32 %v181_v44, %v187_v31  ;;  %v214_v49 = vadd.f32 %v213_v45, %v212_v43 }
 0x21a   :  { %v197_v50 = vadd.f32 %v189_v48, %v188_v47  ;;  %v215_v51 = vadd.f32 %v214_v49, %v207_v46 }
 0x21c   :  { %v198_v52 = vrot.slane %v197_v50, 4  ;;  %216 = vst.msk [vmem:[#allocation7] sm:$0x1] %vm72_vm4, %v215_v51 }
 0x21d   :  { %322 = shalt.err (!%p319_p9)
}
 0x21e   :  { %236 = dma.vmem_to_hbm [thread:$0]  %s234_s2, 16, %s428_s5, [#allocation8]   ;;  %v199_v53 = vadd.f32 %v198_v52, %v197_v50  ;;  %v196_v57 = vld [vmem:[#allocation6] sm:$0x1] }
 0x21f   :  { %s364_s12 = smov [#allocation6]  }
 0x220   :  { %v200_v54 = vrot.slane %v199_v53, 2  ;;  %s223_s13 = sshll.u32 %s364_s12, 4  ;;  %s224_s13 = int_to_ptr.vmem [resolvable:$true] %s223_s13 }
 0x221   :  { %s331_s14 = scalar_lea.vmem %s224_s13, 16  ;;  %s335_s15 = scalar_lea.vmem %s224_s13, 32 }
 0x222   :  { %v201_v55 = vadd.f32 %v200_v54, %v199_v53  ;;  %p332_p10 = scmp.ne.s32.totalorder %s224_s13, %s331_s14  ;;  %p336_p11 = scmp.lt.s32.totalorder %s224_s13, %s224_s13 }
 0x223   :  { %p337_p12 = scmp.lt.s32.totalorder %s335_s15, %s331_s14 }
 0x224   :  { %v202_v56 = vrot.slane %v201_v55, 1 }
 0x225   :  { %p338_p13 = por %p337_p12, %p336_p11 }
 0x226   :  { %v203_v58 = vadd.f32 %v202_v56, %v201_v55 }
 0x227   :  { %p339_p0 = pnand %p338_p13, %p332_p10 }
 0x228   :  { %v204_v59 = vadd.f32 %v203_v58, %v196_v57 }
 0x22a   :  { %206 = vst.msk [vmem:[#allocation6] sm:$0x1] %vm72_vm4, %v204_v59 }
 0x22b   :  { %342 = shalt.err (!%p339_p0)
}
 0x22c   :  { %226 = dma.vmem_to_hbm [thread:$0]  %s224_s13, 16, %s427_s4, [#allocation5]  }
 0x22d   :  { %353 = dma.done.wait [#allocation5], 16  }
 0x22e   :  { %354 = vsyncadd [#allocation5], 4294967280 }
 0x22f   :  { %355 = dma.done.wait [#allocation8], 16  }
 0x230   :  { %356 = vsyncadd [#allocation8], 4294967280 }
 0x231   :  { %243 = vsyncpa [#allocation4], 1 }
 0x232   :  { %244 = vsyncpa [#allocation5], 1 }
 0x233   :  { %245 = vsyncpa [#allocation8], 1 }

</bundles_post_ra>
